<compile_context>
chip_gen: v5e
topology: v5e:2x2
jax: 0.10.0
libtpu: 0.0.40
codegen_flags: <defaults>
</compile_context>

<pallas_src>
import functools

import jax
import jax.numpy as jnp
from jax.experimental import pallas as pl
from jax.experimental.pallas import tpu as pltpu

HIDDEN = 128
SUBLANE = 8


def _round_up(n, m):
    return (n + m - 1) // m * m


# ---- kernel bodies ------------------------------------------------------------------------
def _q_from_refs(x_ref, w1_ref, b1_ref, w2_ref, b2_ref, w3_ref, b3_ref):
    """3 fused matmuls (bf16 operands, f32 accumulation) + Tanh + ReLU. Returns f32 q."""
    x = x_ref[...].astype(jnp.bfloat16)                                 # cast in-kernel
    h1 = jnp.dot(x, w1_ref[...], preferred_element_type=jnp.float32) + b1_ref[...]
    h1 = jnp.tanh(h1).astype(jnp.bfloat16)                              # Tanh (EUP)
    h2 = jnp.dot(h1, w2_ref[...], preferred_element_type=jnp.float32) + b2_ref[...]
    h2 = jnp.maximum(h2, 0.0).astype(jnp.bfloat16)                      # ReLU (VPU)
    return jnp.dot(h2, w3_ref[...], preferred_element_type=jnp.float32) + b3_ref[...]


def _greedy_action(q):
    """argmax over the action axis with first-max tie-break (matches jnp.argmax)."""
    col = jax.lax.broadcasted_iota(jnp.int32, q.shape, 1)
    mx = jnp.max(q, axis=-1, keepdims=True)
    idx = jnp.where(q == mx, col, q.shape[1])
    return jnp.min(idx, axis=-1, keepdims=True).astype(jnp.int32)


def mlp_q_act_kernel(x_ref, w1_ref, b1_ref, w2_ref, b2_ref, w3_ref, b3_ref,
                     q_ref, act_ref):
    q = _q_from_refs(x_ref, w1_ref, b1_ref, w2_ref, b2_ref, w3_ref, b3_ref)
    q_ref[...] = q                                  # only the real out_features columns
    act_ref[...] = _greedy_action(q)                # from the f32 accumulator, pre-cast


def mlp_act_kernel(x_ref, w1_ref, b1_ref, w2_ref, b2_ref, w3_ref, b3_ref, act_ref):
    act_ref[...] = _greedy_action(
        _q_from_refs(x_ref, w1_ref, b1_ref, w2_ref, b2_ref, w3_ref, b3_ref))


# ---- params -------------------------------------------------------------------------------
def init_params(key, in_features, out_features, hidden=HIDDEN):
    """Torch-like nn.Linear init (uniform +/- 1/sqrt(fan_in)); weights stored [in, out]."""
    ks = jax.random.split(key, 6)

    def linear(kw, kb, fan_in, fan_out):
        bound = 1.0 / jnp.sqrt(float(fan_in))
        w = jax.random.uniform(kw, (fan_in, fan_out), jnp.float32, -bound, bound)
        b = jax.random.uniform(kb, (1, fan_out), jnp.float32, -bound, bound)
        return w, b

    w1, b1 = linear(ks[0], ks[1], in_features, hidden)
    w2, b2 = linear(ks[2], ks[3], hidden, hidden)
    w3, b3 = linear(ks[4], ks[5], hidden, out_features)
    return dict(w1=w1, b1=b1, w2=w2, b2=b2, w3=w3, b3=b3)


def pack_params(p):
    """Cast weights to bf16 (MXU-native), biases stay f32. No lane padding needed."""
    return dict(
        w1=p["w1"].astype(jnp.bfloat16),
        b1=p["b1"].astype(jnp.float32),
        w2=p["w2"].astype(jnp.bfloat16),
        b2=p["b2"].astype(jnp.float32),
        w3=p["w3"].astype(jnp.bfloat16),
        b3=p["b3"].astype(jnp.float32),
        in_features=p["w1"].shape[0],
        out_features=p["w3"].shape[1],
    )


# ---- wrapper ------------------------------------------------------------------------------
def _pick_tile(B, tile_b):
    if tile_b is None:
        # Per-step VMEM at 2048 rows is ~1 MiB (x 64 KiB + q 32 KiB, double-buffered,
        # plus ~70 KiB of resident weights) -- far below even v7x's 64 MiB.
        tile_b = 2048
    rows = _round_up(B, SUBLANE)
    tile_b = max(SUBLANE, min(_round_up(tile_b, SUBLANE), rows))
    # Keep >= 2 grid steps whenever there is enough work so a ("parallel",) batch axis
    # actually spreads tiles over both TensorCores on v7x (harmless ~0.35us elsewhere).
    if rows >= 2 * SUBLANE:
        tile_b = min(tile_b, _round_up(pl.cdiv(rows, 2), SUBLANE))
    return tile_b


def _run(x, packed, tile_b, with_q):
    B, f_in = x.shape
    assert f_in == packed["in_features"]
    out_features = packed["out_features"]
    w1, b1, w2, b2, w3, b3 = (packed["w1"], packed["b1"], packed["w2"],
                              packed["b2"], packed["w3"], packed["b3"])

    tile_b = _pick_tile(B, tile_b)
    b_pad = _round_up(B, tile_b)
    xp = x.astype(jnp.float32)
    if b_pad != B:
        xp = jnp.pad(xp, ((0, b_pad - B), (0, 0)))      # small: batch rows only, 8 lanes wide

    row_map = lambda i: (i, 0)       # batch-tiled operands
    const_map = lambda i: (0, 0)     # weights / biases stay resident across grid steps

    in_specs = [
        pl.BlockSpec((tile_b, f_in), row_map),           # last dim == full dim -> legal
        pl.BlockSpec((f_in, HIDDEN), const_map),
        pl.BlockSpec((1, HIDDEN), const_map),
        pl.BlockSpec((HIDDEN, HIDDEN), const_map),
        pl.BlockSpec((1, HIDDEN), const_map),
        pl.BlockSpec((HIDDEN, out_features), const_map),
        pl.BlockSpec((1, out_features), const_map),
    ]
    act_spec = pl.BlockSpec((tile_b, 1), row_map)
    act_shape = jax.ShapeDtypeStruct((b_pad, 1), jnp.int32)

    if with_q:
        kernel = mlp_q_act_kernel
        out_shape = (jax.ShapeDtypeStruct((b_pad, out_features), jnp.float32), act_shape)
        out_specs = (pl.BlockSpec((tile_b, out_features), row_map), act_spec)
    else:
        kernel = mlp_act_kernel
        out_shape = act_shape
        out_specs = act_spec

    out = pl.pallas_call(
        kernel,
        out_shape=out_shape,
        grid=(b_pad // tile_b,),
        in_specs=in_specs,
        out_specs=out_specs,
        compiler_params=pltpu.CompilerParams(
            dimension_semantics=("parallel",),
            vmem_limit_bytes=32 * 1024 * 1024,
        ),
    )(xp, w1, b1, w2, b2, w3, b3)

    if with_q:
        q_pad, act_pad = out
        return q_pad[:B], act_pad[:B, 0]
    return out[:B, 0]


def network_forward(x, packed, tile_b=None):
    """x: [B, in_features] f32 -> (q_values [B, out_features] f32, greedy actions [B] i32)."""
    return _run(x, packed, tile_b, with_q=True)


def network_act(x, packed, tile_b=None):
    """Network.act path: returns only greedy actions [B] int32 (no q writeback)."""
    return _run(x, packed, tile_b, with_q=False)


# ---- pure-JAX references ------------------------------------------------------------------
def network_forward_ref_f32(x, p):
    h1 = jnp.tanh(x @ p["w1"] + p["b1"])
    h2 = jnp.maximum(h1 @ p["w2"] + p["b2"], 0.0)
    return h2 @ p["w3"] + p["b3"]


def network_forward_ref_bf16(x, p):
    """Same math as the kernel: bf16 operands, f32 accumulation."""
    bf = lambda a: a.astype(jnp.bfloat16).astype(jnp.float32)
    h1 = jnp.tanh(bf(x) @ bf(p["w1"]) + p["b1"])
    h2 = jnp.maximum(bf(h1) @ bf(p["w2"]) + p["b2"], 0.0)
    return bf(h2) @ bf(p["w3"]) + p["b3"]


if __name__ == "__main__":
    key = jax.random.PRNGKey(0)
    k_params, k_x1, k_x2 = jax.random.split(key, 3)

    # info_transition = (obs_dim, n_actions); small DQN-like dims.
    in_features, out_features = 8, 4

    params = init_params(k_params, in_features, out_features)
    packed = pack_params(params)

    # 1) act()-style tiny batch (single grid step).
    x_small = jax.random.normal(k_x1, (2, in_features), jnp.float32)
    q_small, a_small = network_forward(x_small, packed)
    q_small = jax.block_until_ready(q_small)
    a_small = jax.block_until_ready(a_small)

    ref_bf = network_forward_ref_bf16(x_small, params)
    ref_f32 = network_forward_ref_f32(x_small, params)
    assert q_small.shape == (2, out_features)
    assert jnp.allclose(q_small, ref_bf, atol=1e-3, rtol=1e-3)
    assert jnp.allclose(q_small, ref_f32, atol=5e-2, rtol=5e-2)   # bf16 drift vs f32 torch math
    assert jnp.array_equal(a_small, jnp.argmax(q_small, axis=1).astype(jnp.int32))

    # act-only variant (skips the q writeback entirely).
    a_only = jax.block_until_ready(network_act(x_small, packed))
    assert jnp.array_equal(a_only, a_small)

    # 2) multi-tile grid path (B=300, tile 128 -> grid of 3 with padded tail rows).
    x_big = jax.random.normal(k_x2, (300, in_features), jnp.float32)
    q_big, a_big = network_forward(x_big, packed, tile_b=128)
    q_big = jax.block_until_ready(q_big)
    a_big = jax.block_until_ready(a_big)

    ref_big = network_forward_ref_bf16(x_big, params)
    assert q_big.shape == (300, out_features)
    assert jnp.allclose(q_big, ref_big, atol=1e-3, rtol=1e-3)
    assert jnp.array_equal(a_big, jnp.argmax(q_big, axis=1).astype(jnp.int32))

    # 3) default-tile path (tile auto-picked, >=2 grid steps so both v7x TCs get work).
    q_def, a_def = network_forward(x_big, packed)
    q_def = jax.block_until_ready(q_def)
    a_def = jax.block_until_ready(a_def)
    assert jnp.allclose(q_def, ref_big, atol=1e-3, rtol=1e-3)
    assert jnp.array_equal(a_def, jnp.argmax(q_def, axis=1).astype(jnp.int32))

    print("KERNEL_OK")
</pallas_src>

<mosaic_0001>
module attributes {stable_mosaic.version = 11 : i64} {
  func.func @mlp_q_act_kernel(%arg0: i32, %arg1: memref<8x8xf32, #tpu.memory_space<vmem>>, %arg2: memref<8x128xbf16, #tpu.memory_space<vmem>>, %arg3: memref<1x128xf32, #tpu.memory_space<vmem>>, %arg4: memref<128x128xbf16, #tpu.memory_space<vmem>>, %arg5: memref<1x128xf32, #tpu.memory_space<vmem>>, %arg6: memref<128x4xbf16, #tpu.memory_space<vmem>>, %arg7: memref<1x4xf32, #tpu.memory_space<vmem>>, %arg8: memref<8x4xf32, #tpu.memory_space<vmem>>, %arg9: memref<8x1xi32, #tpu.memory_space<vmem>>) attributes {dimension_semantics = [#tpu.dimension_semantics<parallel>], iteration_bounds = array<i64: 1>, scalar_prefetch = 0 : i64, scratch_operands = 0 : i64, tpu.core_type = #tpu.core_type<tc>, window_params = [{transform_indices = @transform_0, window_bounds = array<i64: 8, 8>}, {pipeline_mode = #tpu.pipeline_mode<synchronous>, transform_indices = @transform_1, window_bounds = array<i64: 8, 128>}, {pipeline_mode = #tpu.pipeline_mode<synchronous>, transform_indices = @transform_2, window_bounds = array<i64: 1, 128>}, {pipeline_mode = #tpu.pipeline_mode<synchronous>, transform_indices = @transform_3, window_bounds = array<i64: 128, 128>}, {pipeline_mode = #tpu.pipeline_mode<synchronous>, transform_indices = @transform_4, window_bounds = array<i64: 1, 128>}, {pipeline_mode = #tpu.pipeline_mode<synchronous>, transform_indices = @transform_5, window_bounds = array<i64: 128, 4>}, {pipeline_mode = #tpu.pipeline_mode<synchronous>, transform_indices = @transform_6, window_bounds = array<i64: 1, 4>}, {transform_indices = @transform_7, window_bounds = array<i64: 8, 4>}, {transform_indices = @transform_8, window_bounds = array<i64: 8, 1>}]} {
    %c0 = arith.constant 0 : index
    %c0_0 = arith.constant 0 : index
    %0 = vector.load %arg1[%c0, %c0_0] : memref<8x8xf32, #tpu.memory_space<vmem>>, vector<8x8xf32>
    %1 = arith.truncf %0 : vector<8x8xf32> to vector<8x8xbf16>
    %c0_1 = arith.constant 0 : index
    %c0_2 = arith.constant 0 : index
    %2 = vector.load %arg2[%c0_1, %c0_2] : memref<8x128xbf16, #tpu.memory_space<vmem>>, vector<8x128xbf16>
    %cst = arith.constant dense<0.000000e+00> : vector<8x128xf32>
    %3 = tpu.matmul %1, %2, %cst {dimension_numbers = #tpu.dot_dimension_numbers<[1], [0], [0], [1], [0, 0, 1, 1], [], []>} : vector<8x8xbf16>, vector<8x128xbf16>, vector<8x128xf32> -> vector<8x128xf32>
    %c0_3 = arith.constant 0 : index
    %c0_4 = arith.constant 0 : index
    %4 = vector.load %arg3[%c0_3, %c0_4] : memref<1x128xf32, #tpu.memory_space<vmem>>, vector<1x128xf32>
    %5 = vector.broadcast %4 : vector<1x128xf32> to vector<8x128xf32>
    %6 = arith.addf %3, %5 : vector<8x128xf32>
    %7 = math.tanh %6 : vector<8x128xf32>
    %8 = arith.truncf %7 : vector<8x128xf32> to vector<8x128xbf16>
    %c0_5 = arith.constant 0 : index
    %c0_6 = arith.constant 0 : index
    %9 = vector.load %arg4[%c0_5, %c0_6] : memref<128x128xbf16, #tpu.memory_space<vmem>>, vector<128x128xbf16>
    %cst_7 = arith.constant dense<0.000000e+00> : vector<8x128xf32>
    %10 = tpu.matmul %8, %9, %cst_7 {dimension_numbers = #tpu.dot_dimension_numbers<[1], [0], [0], [1], [0, 0, 1, 1], [], []>} : vector<8x128xbf16>, vector<128x128xbf16>, vector<8x128xf32> -> vector<8x128xf32>
    %c0_8 = arith.constant 0 : index
    %c0_9 = arith.constant 0 : index
    %11 = vector.load %arg5[%c0_8, %c0_9] : memref<1x128xf32, #tpu.memory_space<vmem>>, vector<1x128xf32>
    %12 = vector.broadcast %11 : vector<1x128xf32> to vector<8x128xf32>
    %13 = arith.addf %10, %12 : vector<8x128xf32>
    %cst_10 = arith.constant 0.000000e+00 : f32
    %14 = vector.broadcast %cst_10 : f32 to vector<8x128xf32>
    %15 = arith.maximumf %13, %14 : vector<8x128xf32>
    %16 = arith.truncf %15 : vector<8x128xf32> to vector<8x128xbf16>
    %c0_11 = arith.constant 0 : index
    %c0_12 = arith.constant 0 : index
    %17 = vector.load %arg6[%c0_11, %c0_12] : memref<128x4xbf16, #tpu.memory_space<vmem>>, vector<128x4xbf16>
    %cst_13 = arith.constant dense<0.000000e+00> : vector<8x4xf32>
    %18 = tpu.matmul %16, %17, %cst_13 {dimension_numbers = #tpu.dot_dimension_numbers<[1], [0], [0], [1], [0, 0, 1, 1], [], []>} : vector<8x128xbf16>, vector<128x4xbf16>, vector<8x4xf32> -> vector<8x4xf32>
    %c0_14 = arith.constant 0 : index
    %c0_15 = arith.constant 0 : index
    %19 = vector.load %arg7[%c0_14, %c0_15] : memref<1x4xf32, #tpu.memory_space<vmem>>, vector<1x4xf32>
    %20 = vector.broadcast %19 : vector<1x4xf32> to vector<8x4xf32>
    %21 = arith.addf %18, %20 : vector<8x4xf32>
    %c0_16 = arith.constant 0 : index
    %c0_17 = arith.constant 0 : index
    %22 = vector.load %arg8[%c0_16, %c0_17] : memref<8x4xf32, #tpu.memory_space<vmem>>, vector<8x4xf32>
    tpu.vector_store %arg8[%c0_16, %c0_17], %21 {strides = array<i32>} : memref<8x4xf32, #tpu.memory_space<vmem>>, vector<8x4xf32>,
    %23 = tpu.iota {dimensions = array<i32: 1>} : vector<8x4xi32>
    %cst_18 = arith.constant dense<0xFF800000> : vector<8xf32>
    %24 = vector.multi_reduction <maximumf>, %21, %cst_18 [1] : vector<8x4xf32> to vector<8xf32>
    %25 = vector.shape_cast %24 : vector<8xf32> to vector<8x1xf32>
    %26 = vector.broadcast %25 : vector<8x1xf32> to vector<8x4xf32>
    %27 = arith.cmpf oeq, %21, %26 : vector<8x4xf32>
    %c4_i32 = arith.constant 4 : i32
    %28 = vector.broadcast %c4_i32 : i32 to vector<8x4xi32>
    %29 = arith.select %27, %23, %28 : vector<8x4xi1>, vector<8x4xi32>
    %cst_19 = arith.constant dense<2147483647> : vector<8xi32>
    %30 = vector.multi_reduction <minsi>, %29, %cst_19 [1] : vector<8x4xi32> to vector<8xi32>
    %31 = vector.shape_cast %30 : vector<8xi32> to vector<8x1xi32>
    %c0_20 = arith.constant 0 : index
    %c0_21 = arith.constant 0 : index
    %32 = vector.load %arg9[%c0_20, %c0_21] : memref<8x1xi32, #tpu.memory_space<vmem>>, vector<8x1xi32>
    tpu.vector_store %arg9[%c0_20, %c0_21], %31 {strides = array<i32>} : memref<8x1xi32, #tpu.memory_space<vmem>>, vector<8x1xi32>,
    return
  }
  func.func @transform_0(%arg0: i32) -> (i32, i32) {
    %c0_i32 = arith.constant 0 : i32
    %c0_i32_0 = arith.constant 0 : i32
    return %arg0, %c0_i32 : i32, i32
  }
  func.func @transform_1(%arg0: i32) -> (i32, i32) {
    %c0_i32 = arith.constant 0 : i32
    %c0_i32_0 = arith.constant 0 : i32
    %c0_i32_1 = arith.constant 0 : i32
    return %c0_i32, %c0_i32_0 : i32, i32
  }
  func.func @transform_2(%arg0: i32) -> (i32, i32) {
    %c0_i32 = arith.constant 0 : i32
    %c0_i32_0 = arith.constant 0 : i32
    %c0_i32_1 = arith.constant 0 : i32
    return %c0_i32, %c0_i32_0 : i32, i32
  }
  func.func @transform_3(%arg0: i32) -> (i32, i32) {
    %c0_i32 = arith.constant 0 : i32
    %c0_i32_0 = arith.constant 0 : i32
    %c0_i32_1 = arith.constant 0 : i32
    return %c0_i32, %c0_i32_0 : i32, i32
  }
  func.func @transform_4(%arg0: i32) -> (i32, i32) {
    %c0_i32 = arith.constant 0 : i32
    %c0_i32_0 = arith.constant 0 : i32
    %c0_i32_1 = arith.constant 0 : i32
    return %c0_i32, %c0_i32_0 : i32, i32
  }
  func.func @transform_5(%arg0: i32) -> (i32, i32) {
    %c0_i32 = arith.constant 0 : i32
    %c0_i32_0 = arith.constant 0 : i32
    %c0_i32_1 = arith.constant 0 : i32
    return %c0_i32, %c0_i32_0 : i32, i32
  }
  func.func @transform_6(%arg0: i32) -> (i32, i32) {
    %c0_i32 = arith.constant 0 : i32
    %c0_i32_0 = arith.constant 0 : i32
    %c0_i32_1 = arith.constant 0 : i32
    return %c0_i32, %c0_i32_0 : i32, i32
  }
  func.func @transform_7(%arg0: i32) -> (i32, i32) {
    %c0_i32 = arith.constant 0 : i32
    %c0_i32_0 = arith.constant 0 : i32
    return %arg0, %c0_i32 : i32, i32
  }
  func.func @transform_8(%arg0: i32) -> (i32, i32) {
    %c0_i32 = arith.constant 0 : i32
    %c0_i32_0 = arith.constant 0 : i32
    return %arg0, %c0_i32 : i32, i32
  }
}

</mosaic_0001>

<bundles_post_ra>
// kernel: tpu_custom_call.1
= control target key start
LH: loop header
LB: loop body
LE: loop exit
PB: predicated region body
PF: predicated region fallthrough
CT: control target
= control target key end

     0   :  { %14 = vsyncpa [#allocation3], 0  ;;  %s543_s0 = inlined_call_operand.hbm [shape: f32[8,8], index: 0, kind: input, shape index: {}]   ;;  %s544_s1 = inlined_call_operand.hbm [shape: bf16[8,128], index: 1, kind: input, shape index: {}]   ;;  %s545_s2 = inlined_call_operand.vmem [shape: f32[1,128], index: 2, kind: input, shape index: {}]   ;;  %s546_s3 = inlined_call_operand.vmem [shape: bf16[128,128], index: 3, kind: input, shape index: {}]   ;;  %s547_s4 = inlined_call_operand.vmem [shape: f32[1,128], index: 4, kind: input, shape index: {}]   ;;  %s548_s5 = inlined_call_operand.vmem [shape: bf16[128,4], index: 5, kind: input, shape index: {}]   ;;  %s549_s6 = inlined_call_operand.vmem [shape: f32[1,4], index: 6, kind: input, shape index: {}]   ;;  %s550_s7 = inlined_call_operand.vmem [shape: f32[8,4], index: 7, kind: output, shape index: {0}]   ;;  %s551_s8 = inlined_call_operand.vmem [shape: s32[8,1], index: 8, kind: output, shape index: {1}]  }
   0x1   :  { %s21_s29 = sshll.u32 %s543_s0, 4  ;;  %s22_s29 = int_to_ptr.hbm [resolvable:$true] %s21_s29 }
   0x2   :  { %15 = vsyncpa [#allocation5], 0  ;;  %s427_s30 = smov [#allocation2]   ;;  %s32_s12 = sshll.u32 %s544_s1, 4  ;;  %s33_s12 = int_to_ptr.hbm [resolvable:$true] %s32_s12 }
   0x3   :  { %s23_s9 = sshll.u32 %s427_s30, 4  ;;  %s428_s13 = smov [#allocation4]   ;;  %s24_s9 = int_to_ptr.vmem [resolvable:$true] %s23_s9 }
   0x4   :  { %26 = dma.hbm_to_vmem [thread:$0]  %s22_s29, 128, %s24_s9, [#allocation3]  }
   0x5   :  { %s34_s14 = sshll.u32 %s428_s13, 4  ;;  %s35_s14 = int_to_ptr.vmem [resolvable:$true] %s34_s14 }
   0x6   :  { %37 = dma.hbm_to_vmem [thread:$0]  %s33_s12, 64, %s35_s14, [#allocation5]  }
   0x7   :  { %423 = dma.done.wait [#allocation3], 128  }
   0x8   :  { %424 = vsyncadd [#allocation3], 4294967168 }
   0x9   :  { %425 = dma.done.wait [#allocation5], 64  }
   0xa   :  { %426 = vsyncadd [#allocation5], 4294967232  ;;  %vm68_vm0 = vcmask 1043456   ;;  %v59_v0 = vld [vmem:[#allocation4] sm:$0xf]  ;;  %v57_v1 = vld [vmem:[#allocation2] sm:$0xff]  ;;  %v253_v37 = vlaneseq }
   0xb   :  { %v359_v2 = vld [vmem:[%s546_s3 + $0x38] sm:$0xff]  ;;  %v70_v3 = vsel %vm68_vm0, %v59_v0, 0  ;;  %v58_v4 = vpack.c.bf16 %v57_v1, %v57_v1  ;;  %vm64_vm1 = vcmask 64512   ;;  %v358_v5 = vld [vmem:[%s546_s3 + $0x30] sm:$0xff]  ;;  %v357_v6 = vld [vmem:[%s546_s3 + $0x28] sm:$0xff]  ;;  %vm251_vm2 = vcmask 31744  }
   0xc   :  { %79 = vmatpush.bf16.msra.mxu0 %v70_v3  ;;  %155 = vmatpush.bf16.msra.mxu1 %v359_v2  ;;  %v356_v7 = vld [vmem:[%s546_s3 + $0x20] sm:$0xff]  ;;  %v355_v8 = vld [vmem:[%s546_s3 + $0x18] sm:$0xff]  ;;  %v354_v9 = vld [vmem:[%s546_s3 + $0x10] sm:$0xff]  ;;  %v254_v38 = vand.u32 127, %v253_v37  ;;  %vm275_vm5 = vcmask 7168  }
   0xd   :  { %v353_v10 = vld [vmem:[%s546_s3 + $0x8] sm:$0xff]  ;;  %v352_v11 = vld [vmem:[%s546_s3] sm:$0xff]  ;;  %v367_v12 = vld [vmem:[%s548_s5 + $0x38] sm:$0xff] }
   0xe   :  { %238 = vmatpush.bf16.msra.mxu2 %v367_v12  ;;  %v366_v13 = vld [vmem:[%s548_s5 + $0x30] sm:$0xff]  ;;  %v365_v14 = vld [vmem:[%s548_s5 + $0x28] sm:$0xff]  ;;  %v364_v15 = vld [vmem:[%s548_s5 + $0x20] sm:$0xff] }
   0xf   :  { %287 = vmatmul.msk.bf16.vlgmr.msra.gmra.mxu0 %vm64_vm1, %v58_v4  ;;  %v363_v16 = vld [vmem:[%s548_s5 + $0x18] sm:$0xff]  ;;  %v370_v17 = vld [vmem:[%s545_s2] ss:$0 sm:$0xff]  ;;  %v362_v18 = vld [vmem:[%s548_s5 + $0x10] sm:$0xff] }
  0x10   :  { %156 = vmatpush.bf16.msra.mxu1 %v358_v5  ;;  %v361_v24 = vld [vmem:[%s548_s5 + $0x8] sm:$0xff]  ;;  %v360_v25 = vld [vmem:[%s548_s5] sm:$0xff] }
  0x11   :  { %v371_v26 = vld [vmem:[%s547_s4] ss:$0 sm:$0xff] }
  0x12   :  { %239 = vmatpush.bf16.msra.mxu2 %v366_v13  ;;  %v372_v32 = vld [vmem:[%s549_s6] ss:$0 sm:$0xff] }
  0x14   :  { %157 = vmatpush.bf16.msra.mxu1 %v357_v6 }
  0x16   :  { %240 = vmatpush.bf16.msra.mxu2 %v365_v14 }
  0x18   :  { %158 = vmatpush.bf16.msra.mxu1 %v356_v7 }
  0x1a   :  { %241 = vmatpush.bf16.msra.mxu2 %v364_v15 }
  0x1c   :  { %159 = vmatpush.bf16.msra.mxu1 %v355_v8 }
  0x1e   :  { %242 = vmatpush.bf16.msra.mxu2 %v363_v16 }
  0x20   :  { %160 = vmatpush.bf16.msra.mxu1 %v354_v9 }
  0x22   :  { %243 = vmatpush.bf16.msra.mxu2 %v362_v18 }
  0x24   :  { %161 = vmatpush.bf16.msra.mxu1 %v353_v10 }
  0x26   :  { %244 = vmatpush.bf16.msra.mxu2 %v361_v24 }
  0x28   :  { %162 = vmatpush.bf16.msra.mxu1 %v352_v11 }
  0x2a   :  { %245 = vmatpush.bf16.msra.mxu2 %v360_v25 }
  0x8c   :  { %v81_v19 = vpop.f32.mrf.mxu0 }
  0x8d   :  { %v82_v20 = vadd.f32 %v370_v17, %v81_v19 }
  0x8f   :  { %373 = vtanh.f32 %v82_v20 }
  0x94   :  { %v83_v21 = vpop.f32.mrf.mxu0 }
  0x95   :  { %v374_v22 = vpop.eup %373 }
  0x96   :  { %v86_v23 = vpack.c.bf16 %v374_v22, %v374_v22 }
  0x98   :  { %163 = vmatmul.bf16.vlgmr.msra.gmra.mxu1 %v86_v23 }
 0x115   :  { %v164_v27 = vpop.f32.mrf.mxu1 }
 0x116   :  { %v165_v28 = vadd.f32 %v371_v26, %v164_v27 }
 0x118   :  { %v168_v29 = vmax.f32 %v165_v28, 0.0 }
 0x11a   :  { %v169_v30 = vpack.c.bf16 %v168_v29, %v168_v29 }
 0x11c   :  { %246 = vmatmul.bf16.vlgmr.msra.gmra.mxu2 %v169_v30 }
 0x11d   :  { %v166_v31 = vpop.f32.mrf.mxu1 }
 0x19f   :  { %v247_v33 = vpop.f32.mrf.mxu2 }
 0x1a0   :  { %v248_v34 = vadd.f32 %v372_v32, %v247_v33 }
 0x1a2   :  { %v255_v35 = vsel %vm251_vm2, %v248_v34, -inf  ;;  %252 = vst.msk [vmem:[%s550_s7] sm:$0xff] %vm251_vm2, %v248_v34 }
 0x1a3   :  { %256 = vmax.xlane.f32.xlu0 %v255_v35 }
 0x1a7   :  { %v249_v36 = vpop.f32.mrf.mxu2 }
 0x216   :  { %v257_v39 = vpop.xlane.xlu0 %256 }
 0x217   :  { %vm258_vm3 = vcmp.eq.f32.partialorder %v248_v34, %v257_v39 }
 0x218   :  { %v259_v40 = vsel %vm258_vm3, %v254_v38, 4 }
 0x219   :  { %v260_v41 = vsel %vm251_vm2, %v259_v40, 2147483647 }
 0x21a   :  { %v262_v42 = vshra.s32 %v260_v41, 16  ;;  %v261_v44 = vand.u32 65535, %v260_v41 }
 0x21c   :  { %v264_v43 = vcvt.s32.f32 %v262_v42  ;;  %v263_v46 = vcvt.s32.f32 %v261_v44 }
 0x21e   :  { %265 = vmin.xlane.f32.xlu0 %v264_v43 }
 0x291   :  { %v266_v45 = vpop.xlane.xlu0 %265 }
 0x292   :  { %vm267_vm4 = vcmp.eq.f32.partialorder %v264_v43, %v266_v45  ;;  %v272_v48 = vcvt.f32.s32 %v266_v45 }
 0x293   :  { %v268_v47 = vsel %vm267_vm4, %v263_v46, inf }
 0x294   :  { %269 = vmin.xlane.f32.xlu1 %v268_v47  ;;  %v273_v50 = vshll.u32 %v272_v48, 16 }
 0x307   :  { %v270_v49 = vpop.xlane.xlu1 %269 }
 0x308   :  { %v271_v51 = vcvt.f32.s32 %v270_v49 }
 0x30a   :  { %v274_v52 = vadd.s32 %v273_v50, %v271_v51 }
 0x30c   :  { %276 = vst.msk [vmem:[%s551_s8] sm:$0xff] %vm275_vm5, %v274_v52 }
 0x30d   :  { %285 = vsyncpa [#allocation3], 1 }
 0x30e   :  { %286 = vsyncpa [#allocation5], 1 }

</bundles_post_ra>
